<compile_context>
chip_gen: v7x
topology: tpu7x:2x2x1
jax: 0.10.0
libtpu: 0.0.40
codegen_flags: <defaults>
</compile_context>

<pallas_src>
import math
import functools

import jax
import jax.numpy as jnp
from jax import lax
from jax.experimental import pallas as pl
from jax.experimental.pallas import tpu as pltpu


def _round_up(x, m):
    return ((x + m - 1) // m) * m


# ---------------------------------------------------------------------------
# Phase 1: linear projection  (x @ W + b), bf16 operands, f32 accumulation.
# ---------------------------------------------------------------------------
def _linear_kernel(x_ref, w_ref, b_ref, o_ref):
    o_ref[...] = (jnp.dot(x_ref[...], w_ref[...],
                          preferred_element_type=jnp.float32)
                  + b_ref[...]).astype(o_ref.dtype)


def _linear_bf16(x, w, bias, *, row_tile=256):
    """x: (N, Cin) bf16, w: (Cin, Cout) bf16, bias: (1, Cout) f32 -> (N, Cout) bf16."""
    n, c_in = x.shape
    c_out = w.shape[1]
    rt = min(row_tile, _round_up(n, 8))
    n_pad = _round_up(n, rt)
    if n_pad != n:
        x = jnp.pad(x, ((0, n_pad - n), (0, 0)))
    out = pl.pallas_call(
        _linear_kernel,
        out_shape=jax.ShapeDtypeStruct((n_pad, c_out), jnp.bfloat16),
        grid_spec=pltpu.PrefetchScalarGridSpec(
            num_scalar_prefetch=0,
            grid=(n_pad // rt,),
            in_specs=[
                pl.BlockSpec((rt, c_in), lambda i: (i, 0)),
                pl.BlockSpec((c_in, c_out), lambda i: (0, 0)),   # grid-invariant weight
                pl.BlockSpec((1, c_out), lambda i: (0, 0)),
            ],
            out_specs=pl.BlockSpec((rt, c_out), lambda i: (i, 0)),
        ),
        compiler_params=pltpu.CompilerParams(
            dimension_semantics=("parallel",)),
    )(x, w, bias)
    return out[:n] if n_pad != n else out


# ---------------------------------------------------------------------------
# Phase 2: per-head attention with fused output projection.
# grid = (batch, query-tile, head); head is innermost / "arbitrary" (reduction).
# ---------------------------------------------------------------------------
def _attn_kernel(q_ref, k_ref, v_ref, wp_ref, bp_ref,
                 y_ref, attn_ref,
                 acc_ref, *, n_head: int):
    h = pl.program_id(2)
    last_h = pl.num_programs(2) - 1
    inv_n_head = 1.0 / float(n_head)

    q = q_ref[0, 0]            # (tq, hd) bf16, 1/sqrt(hd) already folded in
    k = k_ref[0, 0]            # (Tm, hd) bf16
    v = v_ref[0, 0]            # (Tm, hd) bf16

    # Q @ K^T contracting the last dims — no transposed copy of K.
    att = lax.dot_general(q, k, (((1,), (1,)), ((), ())),
                          preferred_element_type=jnp.float32)       # (tq, Tm) f32

    # Softmax in f32; the reciprocal goes to the (otherwise idle) EUP slot.
    att = att - jnp.max(att, axis=-1, keepdims=True)
    att = jnp.exp(att)
    att = att * pl.reciprocal(jnp.sum(att, axis=-1, keepdims=True), approx=True)

    # Fused per-head output projection: (att @ V_h) @ Wp[h]  -> full-C-wide,
    # lane-dense accumulate (no per-head slab, no masked sub-128 stores).
    y_h = jnp.dot(att.astype(jnp.bfloat16), v,
                  preferred_element_type=jnp.float32)                # (tq, hd) f32
    contrib = jnp.dot(y_h.astype(jnp.bfloat16), wp_ref[0],
                      preferred_element_type=jnp.float32)            # (tq, C)  f32

    att_store = att.astype(attn_ref.dtype)

    @pl.when(h == 0)
    def _():
        acc_ref[...] = contrib
        attn_ref[0] = att_store

    @pl.when(h != 0)
    def _():
        acc_ref[...] += contrib
        attn_ref[0] += att_store

    @pl.when(h == last_h)
    def _():
        y_ref[0] = (acc_ref[...] + bp_ref[...]).astype(y_ref.dtype)
        attn_ref[0] = attn_ref[0] * jnp.asarray(inv_n_head, attn_ref.dtype)


def multihead_attention_with_attention(q_in, k_in, v_in, params, n_head,
                                       *, q_tile=128, attn_dtype=jnp.float32):
    """params: wq/wk/wv/wp as (in, out) = W_pt.T, biases bq/bk/bv/bp as (1, C)."""
    b, t, c = q_in.shape
    _, t_mem, _ = k_in.shape
    assert c % n_head == 0
    hd = c // n_head
    scale = 1.0 / math.sqrt(hd)

    # Host-side bf16 casts (weights + activations); fold 1/sqrt(hd) into Wq/bq.
    wq = (params["wq"] * scale).astype(jnp.bfloat16)
    bq = params["bq"] * scale
    wk = params["wk"].astype(jnp.bfloat16)
    wv = params["wv"].astype(jnp.bfloat16)
    wp = params["wp"].astype(jnp.bfloat16)
    bk, bv, bp = params["bk"], params["bv"], params["bp"]

    q_bf = q_in.astype(jnp.bfloat16).reshape(b * t, c)
    k_bf = k_in.astype(jnp.bfloat16).reshape(b * t_mem, c)
    v_bf = v_in.astype(jnp.bfloat16).reshape(b * t_mem, c)

    # --- Phase 1: projections, computed exactly once (not per query tile). ---
    q_p = _linear_bf16(q_bf, wq, bq)      # (B*T,  C) bf16, pre-scaled
    k_p = _linear_bf16(k_bf, wk, bk)      # (B*Tm, C) bf16
    v_p = _linear_bf16(v_bf, wv, bv)      # (B*Tm, C) bf16

    # Split heads -> (B, H, T, hd); per-head slices become clean BlockSpec blocks.
    q_h = q_p.reshape(b, t, n_head, hd).transpose(0, 2, 1, 3)
    k_h = k_p.reshape(b, t_mem, n_head, hd).transpose(0, 2, 1, 3)
    v_h = v_p.reshape(b, t_mem, n_head, hd).transpose(0, 2, 1, 3)
    wp_h = wp.reshape(n_head, hd, c)

    # Query tiling with padding for ragged T (no giant single-block fallback).
    tq = min(q_tile, _round_up(t, 8))
    t_pad = _round_up(t, tq)
    if t_pad != t:
        q_h = jnp.pad(q_h, ((0, 0), (0, 0), (0, t_pad - t), (0, 0)))
    n_qt = t_pad // tq

    kernel = functools.partial(_attn_kernel, n_head=n_head)

    attn_itemsize = jnp.dtype(attn_dtype).itemsize
    out_itemsize = jnp.dtype(q_in.dtype).itemsize
    cost = pl.CostEstimate(
        flops=4 * b * t_pad * t_mem * c + 2 * b * t_pad * c * c,
        transcendentals=b * n_head * t_pad * t_mem,
        bytes_accessed=(b * t_pad * c * 2 + 2 * b * t_mem * c * 2 + c * c * 2 + 4 * c
                        + b * t_pad * c * out_itemsize
                        + b * t_pad * t_mem * attn_itemsize),
    )

    y_pad, attn_pad = pl.pallas_call(
        kernel,
        out_shape=(
            jax.ShapeDtypeStruct((b, t_pad, c), q_in.dtype),
            jax.ShapeDtypeStruct((b, t_pad, t_mem), attn_dtype),
        ),
        grid_spec=pltpu.PrefetchScalarGridSpec(
            num_scalar_prefetch=0,
            grid=(b, n_qt, n_head),
            in_specs=[
                pl.BlockSpec((1, 1, tq, hd), lambda i, j, h: (i, h, j, 0)),       # Q
                pl.BlockSpec((1, 1, t_mem, hd), lambda i, j, h: (i, h, 0, 0)),    # K
                pl.BlockSpec((1, 1, t_mem, hd), lambda i, j, h: (i, h, 0, 0)),    # V
                pl.BlockSpec((1, hd, c), lambda i, j, h: (h, 0, 0)),              # Wp[h]
                pl.BlockSpec((1, c), lambda i, j, h: (0, 0)),                     # bp
            ],
            out_specs=[
                pl.BlockSpec((1, tq, c), lambda i, j, h: (i, j, 0)),
                pl.BlockSpec((1, tq, t_mem), lambda i, j, h: (i, j, 0)),
            ],
            scratch_shapes=[
                pltpu.VMEM((tq, c), jnp.float32),   # fused output-projection accumulator
            ],
        ),
        compiler_params=pltpu.CompilerParams(
            dimension_semantics=("parallel", "parallel", "arbitrary"),
            vmem_limit_bytes=48 * 1024 * 1024,
        ),
        cost_estimate=cost,
    )(q_h, k_h, v_h, wp_h, bp)

    if t_pad != t:
        return y_pad[:, :t], attn_pad[:, :t]
    return y_pad, attn_pad


# ---------------------------------------------------------------------------
# Plain-JAX f32 reference (mirrors the PyTorch forward, dropout = identity).
# ---------------------------------------------------------------------------
def _reference(q_in, k_in, v_in, params, n_head):
    b, t, c = q_in.shape
    _, t_mem, _ = k_in.shape
    hd = c // n_head

    def lin(x, w, bias):
        return x @ w + bias  # w already (in, out)

    q = lin(q_in, params["wq"], params["bq"]).reshape(b, t, n_head, hd).transpose(0, 2, 1, 3)
    k = lin(k_in, params["wk"], params["bk"]).reshape(b, t_mem, n_head, hd).transpose(0, 2, 1, 3)
    v = lin(v_in, params["wv"], params["bv"]).reshape(b, t_mem, n_head, hd).transpose(0, 2, 1, 3)

    att = jnp.einsum("bhqd,bhkd->bhqk", q, k) / math.sqrt(hd)
    att = jax.nn.softmax(att, axis=-1)
    y = jnp.einsum("bhqk,bhkd->bhqd", att, v)
    y = y.transpose(0, 2, 1, 3).reshape(b, t, c)
    y = lin(y, params["wp"], params["bp"])
    attention = jnp.mean(att, axis=1)
    return y, attention


def init_params(key, c):
    """Deterministic parameter init; weights stored as (in, out) = W_pt.T."""
    ks = jax.random.split(key, 8)
    bound = 1.0 / math.sqrt(c)
    u = lambda k, shape: jax.random.uniform(k, shape, jnp.float32, -bound, bound)
    return {
        "wq": u(ks[0], (c, c)), "bq": u(ks[1], (1, c)),
        "wk": u(ks[2], (c, c)), "bk": u(ks[3], (1, c)),
        "wv": u(ks[4], (c, c)), "bv": u(ks[5], (1, c)),
        "wp": u(ks[6], (c, c)), "bp": u(ks[7], (1, c)),
    }


if __name__ == "__main__":
    key = jax.random.PRNGKey(0)
    b, t, t_mem, c, n_head = 2, 8, 8, 32, 4

    k_q, k_k, k_v, k_p = jax.random.split(key, 4)
    q_in = jax.random.normal(k_q, (b, t, c), jnp.float32)
    k_in = jax.random.normal(k_k, (b, t_mem, c), jnp.float32)
    v_in = jax.random.normal(k_v, (b, t_mem, c), jnp.float32)
    params = init_params(k_p, c)

    y, attn = multihead_attention_with_attention(q_in, k_in, v_in, params, n_head)
    jax.block_until_ready((y, attn))

    # Compare against the f32 reference; tolerances account for bf16 matmul
    # operands (f32 accumulation) and the EUP approximate reciprocal.
    y_ref, attn_ref = _reference(q_in, k_in, v_in, params, n_head)
    assert jnp.allclose(y, y_ref, atol=5e-2, rtol=5e-2), "y mismatch"
    assert jnp.allclose(attn, attn_ref, atol=3e-2, rtol=3e-2), "attention mismatch"

    print("KERNEL_OK")
</pallas_src>

<mosaic_0001>
module attributes {stable_mosaic.version = 11 : i64} {
  func.func @_linear_kernel(%arg0: i32, %arg1: memref<16x32xbf16, #tpu.memory_space<vmem>>, %arg2: memref<32x32xbf16, #tpu.memory_space<vmem>>, %arg3: memref<1x32xf32, #tpu.memory_space<vmem>>, %arg4: memref<16x32xbf16, #tpu.memory_space<vmem>>) attributes {dimension_semantics = [#tpu.dimension_semantics<parallel>], iteration_bounds = array<i64: 1>, scalar_prefetch = 0 : i64, scratch_operands = 0 : i64, tpu.core_type = #tpu.core_type<tc>, window_params = [{transform_indices = @transform_0, window_bounds = array<i64: 16, 32>}, {pipeline_mode = #tpu.pipeline_mode<synchronous>, transform_indices = @transform_1, window_bounds = array<i64: 32, 32>}, {pipeline_mode = #tpu.pipeline_mode<synchronous>, transform_indices = @transform_2, window_bounds = array<i64: 1, 32>}, {transform_indices = @transform_3, window_bounds = array<i64: 16, 32>}]} {
    %c0 = arith.constant 0 : index
    %c0_0 = arith.constant 0 : index
    %0 = vector.load %arg1[%c0, %c0_0] : memref<16x32xbf16, #tpu.memory_space<vmem>>, vector<16x32xbf16>
    %c0_1 = arith.constant 0 : index
    %c0_2 = arith.constant 0 : index
    %1 = vector.load %arg2[%c0_1, %c0_2] : memref<32x32xbf16, #tpu.memory_space<vmem>>, vector<32x32xbf16>
    %cst = arith.constant dense<0.000000e+00> : vector<16x32xf32>
    %2 = tpu.matmul %0, %1, %cst {dimension_numbers = #tpu.dot_dimension_numbers<[1], [0], [0], [1], [0, 0, 1, 1], [], []>} : vector<16x32xbf16>, vector<32x32xbf16>, vector<16x32xf32> -> vector<16x32xf32>
    %c0_3 = arith.constant 0 : index
    %c0_4 = arith.constant 0 : index
    %3 = vector.load %arg3[%c0_3, %c0_4] : memref<1x32xf32, #tpu.memory_space<vmem>>, vector<1x32xf32>
    %4 = vector.broadcast %3 : vector<1x32xf32> to vector<16x32xf32>
    %5 = arith.addf %2, %4 : vector<16x32xf32>
    %6 = arith.truncf %5 : vector<16x32xf32> to vector<16x32xbf16>
    %c0_5 = arith.constant 0 : index
    %c0_6 = arith.constant 0 : index
    %7 = vector.load %arg4[%c0_5, %c0_6] : memref<16x32xbf16, #tpu.memory_space<vmem>>, vector<16x32xbf16>
    tpu.vector_store %arg4[%c0_5, %c0_6], %6 {strides = array<i32>} : memref<16x32xbf16, #tpu.memory_space<vmem>>, vector<16x32xbf16>,
    return
  }
  func.func @transform_0(%arg0: i32) -> (i32, i32) {
    %c0_i32 = arith.constant 0 : i32
    %c0_i32_0 = arith.constant 0 : i32
    return %arg0, %c0_i32 : i32, i32
  }
  func.func @transform_1(%arg0: i32) -> (i32, i32) {
    %c0_i32 = arith.constant 0 : i32
    %c0_i32_0 = arith.constant 0 : i32
    %c0_i32_1 = arith.constant 0 : i32
    return %c0_i32, %c0_i32_0 : i32, i32
  }
  func.func @transform_2(%arg0: i32) -> (i32, i32) {
    %c0_i32 = arith.constant 0 : i32
    %c0_i32_0 = arith.constant 0 : i32
    %c0_i32_1 = arith.constant 0 : i32
    return %c0_i32, %c0_i32_0 : i32, i32
  }
  func.func @transform_3(%arg0: i32) -> (i32, i32) {
    %c0_i32 = arith.constant 0 : i32
    %c0_i32_0 = arith.constant 0 : i32
    return %arg0, %c0_i32 : i32, i32
  }
}

</mosaic_0001>

<bundles_post_ra>
// kernel: tpu_custom_call.1
= control target key start
LH: loop header
LB: loop body
LE: loop exit
PB: predicated region body
PF: predicated region fallthrough
CT: control target
= control target key end

     0   :  { %8 = vsyncpa [#allocation3], 0  ;;  %s325_s0 = inlined_call_operand.hbm [shape: bf16[16,32], index: 0, kind: input, shape index: {}]   ;;  %s326_s1 = inlined_call_operand.hbm [shape: bf16[32,32], index: 1, kind: input, shape index: {}]   ;;  %s327_s2 = inlined_call_operand.vmem [shape: f32[1,32], index: 2, kind: input, shape index: {}]   ;;  %s328_s3 = inlined_call_operand.hbm [shape: bf16[16,32], index: 3, kind: output, shape index: {}]  }
   0x1   :  { %9 = vsyncpa [#allocation6], 0 }
   0x2   :  { %10 = vsyncpa [#allocation4], 0  ;;  %s250_s12 = smov [#allocation2]   ;;  %s178_s16 = scalar_lea.hbm %s325_s0, 128 }
   0x3   :  { %s16_s13 = sshll.u32 %s250_s12, 4  ;;  %p179_p0 = scmp.ne.s32.totalorder %s325_s0, %s178_s16  ;;  %s17_s13 = int_to_ptr.vmem [resolvable:$true] %s16_s13 }
   0x4   :  { %p182_p1 = scmp.lt.u32.totalorder %s178_s16, %s325_s0 }
   0x6   :  { %p184_p2 = pnand %p182_p1, %p179_p0 }
   0x8   :  { %187 = shalt.err (!%p184_p2)
}
   0x9   :  { %s188_s21 = scalar_lea.vmem %s17_s13, 128  ;;  %p193_p4 = scmp.lt.s32.totalorder %s17_s13, %s17_s13 }
   0xa   :  { %p189_p3 = scmp.ne.s32.totalorder %s17_s13, %s188_s21  ;;  %p194_p5 = scmp.lt.s32.totalorder %s188_s21, %s188_s21 }
   0xc   :  { %p195_p6 = por %p194_p5, %p193_p4 }
   0xe   :  { %p196_p7 = pnand %p195_p6, %p189_p3 }
  0x10   :  { %199 = shalt.err (!%p196_p7)
}
  0x11   :  { %s251_s22 = smov 64   ;;  %s252_s23 = smov 4  }
  0x12   :  { %22 = dma.hbm_to_vmem [thread:$0]  %s325_s0, 128, %s17_s13, [#allocation3], %s251_s22, %s251_s22, %s252_s23  }
  0x13   :  { %s253_s26 = smov [#allocation5]   ;;  %s200_s30 = scalar_lea.hbm %s326_s1, 256 }
  0x14   :  { %s28_s27 = sshll.u32 %s253_s26, 4  ;;  %p201_p8 = scmp.ne.s32.totalorder %s326_s1, %s200_s30  ;;  %s29_s27 = int_to_ptr.vmem [resolvable:$true] %s28_s27 }
  0x15   :  { %p204_p9 = scmp.lt.u32.totalorder %s200_s30, %s326_s1 }
  0x17   :  { %p206_p10 = pnand %p204_p9, %p201_p8 }
  0x19   :  { %209 = shalt.err (!%p206_p10)
}
  0x1a   :  { %s210_s8 = scalar_lea.vmem %s29_s27, 256  ;;  %p215_p12 = scmp.lt.s32.totalorder %s29_s27, %s29_s27 }
  0x1b   :  { %p211_p11 = scmp.ne.s32.totalorder %s29_s27, %s210_s8  ;;  %p216_p13 = scmp.lt.s32.totalorder %s210_s8, %s210_s8 }
  0x1d   :  { %p217_p0 = por %p216_p13, %p215_p12 }
  0x1f   :  { %p218_p1 = pnand %p217_p0, %p211_p11 }
  0x21   :  { %221 = shalt.err (!%p218_p1)
}
  0x22   :  { %34 = dma.hbm_to_vmem [thread:$0]  %s326_s1, 256, %s29_s27, [#allocation6], %s251_s22, %s251_s22, %s252_s23  }
  0x23   :  { %244 = dma.done.wait [#allocation3], 128  }
  0x24   :  { %245 = vsyncadd [#allocation3], 4294967168 }
  0x25   :  { %246 = dma.done.wait [#allocation6], 256  }
  0x26   :  { %247 = vsyncadd [#allocation6], 4294967040  ;;  %v254_v0 = vmov 0.0   ;;  %vm255_vm0 = vmmov 0   ;;  %v175_v1 = vld [vmem:[#allocation5] sm:$0xff]   ;;  %v176_v2 = vld [vmem:[#allocation5 + $0x8] sm:$0xff]  }
  0x27   :  { %160 = vmatprep.subr.bf16.mxu0 %v254_v0  ;;  %164 = vmatprep.mubr.msk.bf16.mxu0 %vm255_vm0, %v254_v0  ;;  %v177_v3 = vld [vmem:[#allocation2] sm:$0xff]   ;;  %vm74_vm1 = vcmask 261120   ;;  %vm127_vm2 = vcmask 257024   ;;  %s256_s1 = smov [#allocation7]  }
  0x28   :  { %161 = vmatpush3.bf16.msra.mxu0 %v175_v1  ;;  %v148_v4 = vld [vmem:[%s327_s2] ss:$0 sm:$0xff]  ;;  %s135_s12 = sshll.u32 %s256_s1, 4  ;;  %s136_s12 = int_to_ptr.vmem [resolvable:$true] %s135_s12 }
  0x29   :  { %162 = vmatprep.subr.bf16.mxu0 %v254_v0  ;;  %s222_s13 = scalar_lea.vmem %s136_s12, 128  ;;  %p227_p3 = scmp.lt.s32.totalorder %s136_s12, %s136_s12 }
  0x2a   :  { %p223_p2 = scmp.ne.s32.totalorder %s136_s12, %s222_s13  ;;  %p228_p4 = scmp.lt.s32.totalorder %s222_s13, %s222_s13 }
  0x2c   :  { %163 = vmatpush3.bf16.msra.mxu0 %v176_v2  ;;  %p229_p5 = por %p228_p4, %p227_p3 }
  0x2e   :  { %p230_p6 = pnand %p229_p5, %p223_p2 }
  0x2f   :  { %165 = vmatmul.mubr.msk.bf16.vlgmr.msra.gmra.mrb[0].mxu0 %vm74_vm1, %v177_v3 }
 0x102   :  { %v112_v5 = vpop.f32.mrb[0].mxu0 }
 0x103   :  { %v113_v6 = vadd.f32 %v148_v4, %v112_v5  ;;  %v166_v7 = vpop.f32.mrb[1].mxu0 }
 0x104   :  { %v115_v8 = vpop.f32.mrb[2].mxu0 }
 0x105   :  { %v155_v9 = vpack.c.bf16 %v113_v6, %v113_v6  ;;  %v116_v10 = vadd.f32 %v148_v4, %v115_v8  ;;  %v167_v11 = vpop.f32.mrb[3].mxu0 }
 0x107   :  { %v156_v12 = vpack.c.bf16 %v116_v10, %v116_v10  ;;  %128 = vst.msk [vmem:[#allocation7] sm:$0xf] %vm127_vm2, %v155_v9 }
 0x109   :  { %129 = vst.msk [vmem:[#allocation7 + $0x4] sm:$0xf] %vm127_vm2, %v156_v12 }
 0x10a   :  { %233 = shalt.err (!%p230_p6)
}
 0x10b   :  { %s234_s15 = scalar_lea.hbm %s328_s3, 128 }
 0x10c   :  { %p235_p7 = scmp.ne.s32.totalorder %s328_s3, %s234_s15  ;;  %p238_p8 = scmp.lt.u32.totalorder %s234_s15, %s328_s3 }
 0x10e   :  { %p240_p9 = pnand %p238_p8, %p235_p7 }
 0x110   :  { %243 = shalt.err (!%p240_p9)
}
 0x111   :  { %141 = dma.vmem_to_hbm [thread:$0]  %s136_s12, 128, %s328_s3, [#allocation4], %s251_s22, %s251_s22, %s252_s23  }
 0x112   :  { %248 = dma.done.wait [#allocation4], 128  }
 0x113   :  { %249 = vsyncadd [#allocation4], 4294967168 }
 0x114   :  { %145 = vsyncpa [#allocation3], 1 }
 0x115   :  { %146 = vsyncpa [#allocation6], 1 }
 0x116   :  { %147 = vsyncpa [#allocation4], 1 }

</bundles_post_ra>
